<compile_context>
chip_gen: v5e
topology: v5e:2x2
jax: 0.10.0
libtpu: 0.0.40
codegen_flags: <defaults>
</compile_context>

<pallas_src>
import math

import jax
import jax.numpy as jnp
from jax.experimental import pallas as pl
from jax.experimental.pallas import tpu as pltpu


MATMUL_DTYPE = jnp.bfloat16     # MXU operand dtype (bf16-native on v5e/v6e/v7x)
INTER_DTYPE = jnp.bfloat16      # inter-stage intermediate (conv1 output)
K_TILE = 512                    # K-streaming slab (multiple of 8 and of 128)


def _tpu_vmem_capacity_bytes():
    # Generation-dependent sizing (v5e/v6e: 128 MiB VMEM per core, v7x: 64 MiB).
    try:
        cap = getattr(pltpu.get_tpu_info(), "vmem_capacity_bytes", None)
        if cap:
            return int(cap)
    except Exception:
        pass
    return 64 * 1024 * 1024     # conservative default (v7x per-TC VMEM)


_BIG_VMEM = _tpu_vmem_capacity_bytes() >= 128 * 1024 * 1024
VMEM_LIMIT_BYTES = (80 if _BIG_VMEM else 48) * 1024 * 1024
TOKEN_TILE = 1024 if _BIG_VMEM else 512


# ----------------------------- Pallas kernels ------------------------------

def _conv1_matmul_kernel(p_ref, w_ref, b_ref, o_ref, acc_ref):
    # p_ref: (tK, tN) patches, w_ref: (Cout, tK), b_ref: (Cout, 1),
    # o_ref: (Cout, tN), acc_ref: (Cout, tN) f32 accumulator over the K axis.
    @pl.when(pl.program_id(2) == 0)
    def _init():
        acc_ref[...] = jnp.zeros_like(acc_ref)

    acc_ref[...] += jnp.dot(w_ref[...], p_ref[...],
                            preferred_element_type=jnp.float32)

    @pl.when(pl.program_id(2) == pl.num_programs(2) - 1)
    def _finalize():
        o_ref[...] = (acc_ref[...] + b_ref[...]).astype(o_ref.dtype)


def _ext_attn_conv2_relu_kernel(x_ref, w0_ref, w1_ref, w2_ref, idn_ref, o_ref):
    # x_ref : (C, 27)      bf16  conv1 output tokens for this batch
    # w0_ref: (Kd, C)      bf16  linear_0 weight
    # w1_ref: (C, Kd)      bf16  linear_1 weight
    # w2_ref: (27, C, C)   bf16  conv2 weight, kernel-position-major
    # idn_ref / o_ref: (C, M)    residual input / final output for this batch
    xv = x_ref[...]
    attn = jnp.dot(w0_ref[...], xv, preferred_element_type=jnp.float32)   # (Kd, 27)
    # softmax over the token axis (exact divides: the approx EUP reciprocal was
    # the source of the previous correctness failure).
    attn = jnp.exp(attn - jnp.max(attn, axis=-1, keepdims=True))
    attn = attn / jnp.sum(attn, axis=-1, keepdims=True)
    # L1-normalise over the k axis (dim=1 of the (b, k, n) tensor).
    attn = attn / (1e-9 + jnp.sum(attn, axis=0, keepdims=True))
    a = jnp.dot(w1_ref[...], attn.astype(MATMUL_DTYPE),
                preferred_element_type=jnp.float32)                       # (C, 27)
    a = a.astype(MATMUL_DTYPE)

    # conv2 fused in-register: its output is a single (C,) voxel, equal to
    # sum_t W2[t] @ a[:, t] because the 27 conv1-output tokens ARE conv2's
    # 3x3x3 receptive field in matching (kd, kh, kw) order.
    cout = w2_ref.shape[1]
    y2 = jnp.zeros((cout, 1), jnp.float32)
    for t in range(27):   # static unroll: 27 accumulating (C, C) @ (C, 1) dots
        y2 = y2 + jnp.dot(w2_ref[t], a[:, t:t + 1],
                          preferred_element_type=jnp.float32)

    # residual broadcast (PyTorch 1x1x1 output + idn) + ReLU fused into the store.
    o_ref[...] = jnp.maximum(idn_ref[...].astype(jnp.float32) + y2,
                             0.0).astype(o_ref.dtype)


# ------------------------------ JAX wrappers --------------------------------

def _im2col3d(x):
    """(B, Cin, D, H, W) -> (B, Cin*27, N) patches with the token axis LAST.

    K is ordered (cin, kd, kh, kw), matching weight.reshape(Cout, Cin*27)."""
    B, Cin, D, H, W = x.shape
    Do, Ho, Wo = D - 2, H - 2, W - 2
    slabs = []
    for kd in range(3):
        for kh in range(3):
            for kw in range(3):
                slabs.append(x[:, :, kd:kd + Do, kh:kh + Ho, kw:kw + Wo])
    p = jnp.stack(slabs, axis=2)                  # (B, Cin, 27, Do, Ho, Wo)
    # TODO(synk): at production sizes, replace this 27x host-side im2col HBM
    # expansion with 27 shifted accumulating dots on the raw x tile inside the
    # conv kernel (the patches are cast to bf16 below, which already halves it).
    return p.reshape(B, Cin * 27, Do * Ho * Wo), (Do, Ho, Wo)


def conv3d_valid_flat(x5d, weight, bias):
    """Conv3d(kernel=3, stride=1, VALID) -> (B, Cout, N) bf16, tokens on lanes."""
    B, Cin = x5d.shape[:2]
    Cout = weight.shape[0]
    p, (Do, Ho, Wo) = _im2col3d(x5d)
    K, N = p.shape[1], p.shape[2]
    p = p.astype(MATMUL_DTYPE)
    w2d = weight.reshape(Cout, Cin * 27).astype(MATMUL_DTYPE)
    b2d = bias.reshape(Cout, 1).astype(jnp.float32)

    # Token tile: full N when small, else a multiple of 128 for lane-dense stores.
    tN = N if N <= TOKEN_TILE else TOKEN_TILE
    # K-streaming slab: full K when small, else zero-pad K (zeros contribute
    # nothing to the accumulator) to a multiple of K_TILE and stream it, so the
    # weight never has to be fully VMEM-resident (v7x: 64 MiB VMEM).
    if K <= K_TILE:
        tK = K
    else:
        tK = K_TILE
        Kp = -(-K // tK) * tK
        if Kp != K:
            p = jnp.pad(p, ((0, 0), (0, Kp - K), (0, 0)))
            w2d = jnp.pad(w2d, ((0, 0), (0, Kp - K)))
            K = Kp

    out = pl.pallas_call(
        _conv1_matmul_kernel,
        out_shape=jax.ShapeDtypeStruct((B, Cout, N), INTER_DTYPE),
        grid=(B, pl.cdiv(N, tN), K // tK),
        in_specs=[
            pl.BlockSpec((None, tK, tN), lambda b, j, k: (b, k, j)),
            pl.BlockSpec((Cout, tK), lambda b, j, k: (0, k)),
            pl.BlockSpec((Cout, 1), lambda b, j, k: (0, 0)),
        ],
        out_specs=pl.BlockSpec((None, Cout, tN), lambda b, j, k: (b, 0, j)),
        scratch_shapes=[pltpu.VMEM((Cout, tN), jnp.float32)],
        compiler_params=pltpu.CompilerParams(
            dimension_semantics=("parallel", "parallel", "arbitrary"),
            vmem_limit_bytes=VMEM_LIMIT_BYTES),
    )(p, w2d, b2d)
    return out, (Do, Ho, Wo)


def external_attention_forward(x, params):
    idn = x
    B, C, D, H, W = x.shape
    if (D, H, W) != (5, 5, 5):
        # PyTorch's `x + idn` only broadcasts when conv2's output is 1x1x1,
        # i.e. the input spatial size is exactly 5 (the module's only valid shape).
        raise ValueError("External_attention requires a 5x5x5 spatial input")

    # conv1 -> (B, C, 27) bf16 with tokens on the lane axis (the attention layout).
    y, (Do, Ho, Wo) = conv3d_valid_flat(x, params["conv1_w"], params["conv1_b"])
    N = Do * Ho * Wo                      # 27
    Kd = params["lin0_w"].shape[0]
    M = D * H * W

    w0 = params["lin0_w"].astype(MATMUL_DTYPE)             # (Kd, C)
    w1 = params["lin1_w"].astype(MATMUL_DTYPE)             # (C, Kd)
    # conv2 weight rearranged kernel-position-major so the fused epilogue indexes
    # it with cheap leading-axis loads: (Cout, Cin, 3,3,3) -> (27, Cout, Cin).
    w2 = params["conv2_w"].reshape(C, C, 27).transpose(2, 0, 1).astype(MATMUL_DTYPE)
    idn_flat = idn.reshape(B, C, M)

    # Fused: linear_0 -> softmax(tokens) -> L1-over-k -> linear_1 -> conv2 ->
    # residual broadcast -> ReLU.  One pallas_call, gridded over batch (>=2, so
    # both v7x TensorCores get work); attn_out never touches HBM.
    # TODO(synk): for production N, tile the token axis with a two-pass softmax
    # (stats pass + renormalise/output pass) instead of keeping the (C,N)+(Kd,N)
    # working set resident per batch.
    out = pl.pallas_call(
        _ext_attn_conv2_relu_kernel,
        out_shape=jax.ShapeDtypeStruct((B, C, M), x.dtype),
        grid=(B,),
        in_specs=[
            pl.BlockSpec((None, C, N), lambda b: (b, 0, 0)),
            pl.BlockSpec((Kd, C), lambda b: (0, 0)),
            pl.BlockSpec((C, Kd), lambda b: (0, 0)),
            pl.BlockSpec((27, C, C), lambda b: (0, 0, 0)),
            pl.BlockSpec((None, C, M), lambda b: (b, 0, 0)),
        ],
        out_specs=pl.BlockSpec((None, C, M), lambda b: (b, 0, 0)),
        compiler_params=pltpu.CompilerParams(
            dimension_semantics=("parallel",),
            vmem_limit_bytes=VMEM_LIMIT_BYTES),
    )(y, w0, w1, w2, idn_flat)
    return out.reshape(idn.shape)


# ----------------------- deterministic parameter init -----------------------

def init_params(key, c, k=64):
    k1, k2, k3, k4 = jax.random.split(key, 4)
    n_conv = 3 * 3 * 3 * c
    conv1_w = jax.random.normal(k1, (c, c, 3, 3, 3), jnp.float32) * math.sqrt(2.0 / n_conv)
    bound = 1.0 / math.sqrt(c * 27)   # PyTorch's default Conv3d bias init
    conv1_b = jax.random.uniform(k2, (c,), jnp.float32, -bound, bound)
    # linear_1.weight is a permuted *view* of linear_0.weight's storage; after the
    # module's init loop both end up tied to the N(0, sqrt(2/c)) draw for linear_1.
    lin1_w = jax.random.normal(k3, (c, k), jnp.float32) * math.sqrt(2.0 / c)   # (c, k)
    lin0_w = lin1_w.T                                                          # (k, c)
    conv2_w = jax.random.normal(k4, (c, c, 3, 3, 3), jnp.float32) * math.sqrt(2.0 / n_conv)
    return dict(conv1_w=conv1_w, conv1_b=conv1_b,
                lin0_w=lin0_w, lin1_w=lin1_w, conv2_w=conv2_w)


# ------------------------------ pure-JAX reference ---------------------------

def reference_forward(x, params, matmul_dtype=jnp.float32, inter_dtype=jnp.float32):
    """Pure-JAX reference.  With the default f32 dtypes this is the exact PyTorch
    forward; with (bfloat16, bfloat16) it mirrors the kernel's operand casts
    (f32 accumulation everywhere) for a tight structural check."""
    idn = x
    B, C = x.shape[:2]
    p, (Do, Ho, Wo) = _im2col3d(x)
    w1c = params["conv1_w"].reshape(C, -1).astype(matmul_dtype)
    y = jnp.einsum("ok,bkn->bon", w1c, p.astype(matmul_dtype),
                   preferred_element_type=jnp.float32)
    y = (y + params["conv1_b"][None, :, None]).astype(inter_dtype)

    attn = jnp.einsum("kc,bcn->bkn", params["lin0_w"].astype(matmul_dtype),
                      y.astype(matmul_dtype), preferred_element_type=jnp.float32)
    attn = jax.nn.softmax(attn, axis=-1)
    attn = attn / (1e-9 + attn.sum(axis=1, keepdims=True))
    a = jnp.einsum("ck,bkn->bcn", params["lin1_w"].astype(matmul_dtype),
                   attn.astype(matmul_dtype), preferred_element_type=jnp.float32)

    # conv2 on the (B, C, 3, 3, 3) attention output -> one (B, C) voxel.
    w2c = params["conv2_w"].reshape(C, -1).astype(matmul_dtype)
    y2 = jnp.einsum("ok,bk->bo", w2c, a.astype(matmul_dtype).reshape(B, -1),
                    preferred_element_type=jnp.float32)
    out = jax.nn.relu(idn.reshape(B, C, -1) + y2[:, :, None])
    return out.reshape(x.shape)


# ---------------------------------- main ------------------------------------

if __name__ == "__main__":
    key = jax.random.PRNGKey(0)
    kx, kp = jax.random.split(key)

    B, C, S = 2, 4, 5   # spatial must be 5: the 1x1x1 conv2 output broadcasts onto idn
    x = jax.random.normal(kx, (B, C, S, S, S), jnp.float32)
    params = init_params(kp, C, k=64)

    out = jax.block_until_ready(external_attention_forward(x, params))
    assert out.shape == x.shape, (out.shape, x.shape)

    # Tight structural check: reference with the same bf16 operand casts
    # (f32 accumulation, exact divides) as the kernel.
    ref_cast = reference_forward(x, params, matmul_dtype=MATMUL_DTYPE,
                                 inter_dtype=INTER_DTYPE)
    err_cast = float(jnp.max(jnp.abs(out - ref_cast)))
    assert jnp.allclose(out, ref_cast, atol=3e-3, rtol=3e-3), err_cast

    # Loose end-to-end check vs the exact f32 reference: the only gap is the
    # bf16 rounding of the matmul operands / the bf16 conv1 intermediate.
    ref_f32 = reference_forward(x, params)
    err_f32 = float(jnp.max(jnp.abs(out - ref_f32)))
    assert jnp.allclose(out, ref_f32, atol=1e-1, rtol=1e-1), err_f32

    print("KERNEL_OK")
</pallas_src>

<mosaic_0001>
module attributes {stable_mosaic.version = 11 : i64} {
  func.func @_conv1_matmul_kernel(%arg0: i32, %arg1: i32, %arg2: i32, %arg3: memref<1x108x27xbf16, #tpu.memory_space<vmem>>, %arg4: memref<4x108xbf16, #tpu.memory_space<vmem>>, %arg5: memref<4x1xf32, #tpu.memory_space<vmem>>, %arg6: memref<1x4x27xbf16, #tpu.memory_space<vmem>>, %arg7: memref<4x27xf32, #tpu.memory_space<vmem>>) attributes {dimension_semantics = [#tpu.dimension_semantics<parallel>, #tpu.dimension_semantics<parallel>, #tpu.dimension_semantics<arbitrary>], iteration_bounds = array<i64: 2, 1, 1>, scalar_prefetch = 0 : i64, scratch_operands = 1 : i64, tpu.core_type = #tpu.core_type<tc>, window_params = [{transform_indices = @transform_0, window_bounds = array<i64: 1, 108, 27>}, {transform_indices = @transform_1, window_bounds = array<i64: 4, 108>}, {pipeline_mode = #tpu.pipeline_mode<synchronous>, transform_indices = @transform_2, window_bounds = array<i64: 4, 1>}, {transform_indices = @transform_3, window_bounds = array<i64: 1, 4, 27>}]} {
    %c0_i32 = arith.constant 0 : i32
    %0 = arith.cmpi eq, %arg2, %c0_i32 : i32
    %1 = arith.extui %0 : i1 to i32
    %c0_i32_0 = arith.constant 0 : i32
    %2 = arith.cmpi ne, %1, %c0_i32_0 : i32
    scf.if %2 {
      %cst_11 = arith.constant 0.000000e+00 : f32
      %13 = vector.broadcast %cst_11 : f32 to vector<4x27xf32>
      %c0_12 = arith.constant 0 : index
      %c0_13 = arith.constant 0 : index
      %14 = vector.load %arg7[%c0_12, %c0_13] : memref<4x27xf32, #tpu.memory_space<vmem>>, vector<4x27xf32>
      tpu.vector_store %arg7[%c0_12, %c0_13], %13 {strides = array<i32>} : memref<4x27xf32, #tpu.memory_space<vmem>>, vector<4x27xf32>,
    } else {
    }
    %c0 = arith.constant 0 : index
    %c0_1 = arith.constant 0 : index
    %3 = vector.load %arg7[%c0, %c0_1] : memref<4x27xf32, #tpu.memory_space<vmem>>, vector<4x27xf32>
    %c0_2 = arith.constant 0 : index
    %c0_3 = arith.constant 0 : index
    %4 = vector.load %arg4[%c0_2, %c0_3] : memref<4x108xbf16, #tpu.memory_space<vmem>>, vector<4x108xbf16>
    %c0_4 = arith.constant 0 : index
    %c0_5 = arith.constant 0 : index
    %c0_6 = arith.constant 0 : index
    %5 = vector.load %arg3[%c0_4, %c0_5, %c0_6] : memref<1x108x27xbf16, #tpu.memory_space<vmem>>, vector<1x108x27xbf16>
    %6 = vector.shape_cast %5 : vector<1x108x27xbf16> to vector<108x27xbf16>
    %cst = arith.constant dense<0.000000e+00> : vector<4x27xf32>
    %7 = tpu.matmul %4, %6, %cst {dimension_numbers = #tpu.dot_dimension_numbers<[1], [0], [0], [1], [0, 0, 1, 1], [], []>} : vector<4x108xbf16>, vector<108x27xbf16>, vector<4x27xf32> -> vector<4x27xf32>
    %8 = arith.addf %3, %7 : vector<4x27xf32>
    %c0_7 = arith.constant 0 : index
    %c0_8 = arith.constant 0 : index
    %9 = vector.load %arg7[%c0_7, %c0_8] : memref<4x27xf32, #tpu.memory_space<vmem>>, vector<4x27xf32>
    tpu.vector_store %arg7[%c0_7, %c0_8], %8 {strides = array<i32>} : memref<4x27xf32, #tpu.memory_space<vmem>>, vector<4x27xf32>,
    %c0_i32_9 = arith.constant 0 : i32
    %10 = arith.cmpi eq, %arg2, %c0_i32_9 : i32
    %11 = arith.extui %10 : i1 to i32
    %c0_i32_10 = arith.constant 0 : i32
    %12 = arith.cmpi ne, %11, %c0_i32_10 : i32
    scf.if %12 {
      %c0_11 = arith.constant 0 : index
      %c0_12 = arith.constant 0 : index
      %13 = vector.load %arg7[%c0_11, %c0_12] : memref<4x27xf32, #tpu.memory_space<vmem>>, vector<4x27xf32>
      %c0_13 = arith.constant 0 : index
      %c0_14 = arith.constant 0 : index
      %14 = vector.load %arg5[%c0_13, %c0_14] : memref<4x1xf32, #tpu.memory_space<vmem>>, vector<4x1xf32>
      %15 = vector.broadcast %14 : vector<4x1xf32> to vector<4x27xf32>
      %16 = arith.addf %13, %15 : vector<4x27xf32>
      %17 = arith.truncf %16 : vector<4x27xf32> to vector<4x27xbf16>
      %c0_15 = arith.constant 0 : index
      %c0_16 = arith.constant 0 : index
      %c0_17 = arith.constant 0 : index
      %18 = vector.load %arg6[%c0_15, %c0_16, %c0_17] : memref<1x4x27xbf16, #tpu.memory_space<vmem>>, vector<1x4x27xbf16>
      %19 = vector.shape_cast %18 : vector<1x4x27xbf16> to vector<4x27xbf16>
      %20 = vector.shape_cast %17 : vector<4x27xbf16> to vector<1x4x27xbf16>
      tpu.vector_store %arg6[%c0_15, %c0_16, %c0_17], %20 {strides = array<i32>} : memref<1x4x27xbf16, #tpu.memory_space<vmem>>, vector<1x4x27xbf16>,
    } else {
    }
    return
  }
  func.func @transform_0(%arg0: i32, %arg1: i32, %arg2: i32) -> (i32, i32, i32) {
    %c0_i32 = arith.constant 0 : i32
    return %arg0, %arg2, %arg1 : i32, i32, i32
  }
  func.func @transform_1(%arg0: i32, %arg1: i32, %arg2: i32) -> (i32, i32) {
    %c0_i32 = arith.constant 0 : i32
    %c0_i32_0 = arith.constant 0 : i32
    return %c0_i32, %arg2 : i32, i32
  }
  func.func @transform_2(%arg0: i32, %arg1: i32, %arg2: i32) -> (i32, i32) {
    %c0_i32 = arith.constant 0 : i32
    %c0_i32_0 = arith.constant 0 : i32
    %c0_i32_1 = arith.constant 0 : i32
    return %c0_i32, %c0_i32_0 : i32, i32
  }
  func.func @transform_3(%arg0: i32, %arg1: i32, %arg2: i32) -> (i32, i32, i32) {
    %c0_i32 = arith.constant 0 : i32
    %c0_i32_0 = arith.constant 0 : i32
    return %arg0, %c0_i32, %arg1 : i32, i32, i32
  }
}

</mosaic_0001>

<bundles_post_ra>
// kernel: tpu_custom_call.1
= control target key start
LH: loop header
LB: loop body
LE: loop exit
PB: predicated region body
PF: predicated region fallthrough
CT: control target
= control target key end

     0   :  { %8 = vsyncpa [#allocation4], 0  ;;  %s762_s0 = inlined_call_operand.vmem [shape: bf16[2,108,27], index: 0, kind: input, shape index: {}]   ;;  %s763_s1 = inlined_call_operand.vmem [shape: bf16[4,108], index: 1, kind: input, shape index: {}]   ;;  %s764_s2 = inlined_call_operand.vmem [shape: f32[4,1], index: 2, kind: input, shape index: {}]   ;;  %s765_s3 = inlined_call_operand.hbm [shape: bf16[2,4,27], index: 3, kind: output, shape index: {}]  }
   0x1   :  { %10 = vsyncpa [#allocation4 + $0x1], 0  ;;  %s657_s12 = smov 0   ;;  %s659_s13 = smov 0  }
   0x2   :  { %s661_s14 = smov 0   ;;  %s663_s15 = smov 0  }
   0x3   :  { %s665_s16 = smov 0   ;;  %s667_s17 = smov 0  }
   0x4 LB: > { %s448_s18 = sadd.s32 4294967295, %s633_s17   ;;  %s449_s19 = sadd.s32 4294967294, %s633_s17   ;;  %s633_s17 = sphi %s667_s17, %s16_s17   ;;  %s629_s16 = sphi %s665_s16, %s772_s16   ;;  %s625_s15 = sphi %s663_s15, %s771_s15   ;;  %s621_s14 = sphi %s661_s14, %s770_s14   ;;  %s617_s13 = sphi %s659_s13, %s769_s13   ;;  %s613_s12 = sphi %s657_s12, %s768_s12  }
   0x5   : > { %s35_s20 = sadd.s32 1, %s629_s16  ;;  %s121_s21 = sadd.s32 1, %s621_s14 }
   0x6   : > { %p37_p0 = scmp.ge.s32.totalorder %s35_s20, 2  ;;  %p131_p1 = scmp.ne.s32.totalorder %s621_s14, %s617_s13 }
   0x7   : > { %p132_p2 = scmp.eq.s32.totalorder %s448_s18, 1  ;;  %p137_p3 = scmp.ne.s32.totalorder %s617_s13, %s613_s12 }
   0x8   : > { %s774_s20 = smov (%p37_p0, %s35_s20), 0  ;;  %p138_p5 = scmp.eq.s32.totalorder %s449_s19, 1 }
   0x9   : > { %p697_p4 = por %p132_p2, %p131_p1  ;;  %s116_s23 = ssub.s32 %s629_s16, %s774_s20 }
   0xa   : > { %p453_p6 = scmp.ge.s32.totalorder %s633_s17, 1  ;;  %p119_p7 = scmp.eq.s32.totalorder %s116_s23, 0 }
   0xb   : > { %p704_p8 = por %p138_p5, %p137_p3  ;;  %p182_p9 = scmp.lt.s32.totalorder %s633_s17, 3 }
   0xc   : > { %s710_s25 = scalar_select %p119_p7, %s621_s14, %s121_s21  }
   0xd   : > { %p183_p10 = pnand %p453_p6, %p182_p9 }
   0xe   : > { %p218_p11 = scmp.lt.s32.totalorder (!%p183_p10), %s625_s15, 1  ;;  %s214_s8 = sand.u32 (!%p183_p10), 1, %s617_s13  }
   0xf   : > { %186 = sbr.rel (%p183_p10) target bundleno = 199 (0xc7), region = 32  ;;  %s454_s9 = sshll.u32 (!%p183_p10), %s214_s8, 1 }
  0x10   : > { %s486_s10 = sshll.u32 (!%p183_p10), %s625_s15, 1  ;;  %s216_s21 = scalar_lea.vmem (!%p183_p10), [#allocation3], %s454_s9 }
  0x11   : > { %s348_s19 = scalar_lea.hbm (!%p183_p10), %s765_s3, %s486_s10  ;;  %s350_s23 = sshll.u32 (!%p183_p10), %s216_s21, 4  ;;  %s351_s23 = int_to_ptr.vmem [resolvable:$true] %s350_s23 }
  0x12   : > { %s575_s4 = scalar_lea.hbm (!%p183_p10), %s765_s3, 4 }
  0x14   : > { %s219_s26 = scalar_select %p218_p11, %s625_s15, 1  ;;  %v326_v0 = vld [vmem:[%s764_s2] sm:$0xf]  ;;  %vm239_vm0 = vcmask 216064   ;;  %vm302_vm1 = vcmask 1045504   ;;  %v635_v3 = vmov 0  }
  0x15   : > { %554 = vset.pattern.permute.xlu0 %v635_v3  ;;  %v636_v5 = vmov 0.0   ;;  %v242_v13 = vld [vmem:[%s763_s1] sm:$0x3]  ;;  %vm298_vm2 = vcmask 883712   ;;  %vm334_vm3 = vcmask 214016  }
  0x16   : > { %s496_s27 = smul.u32 56, %s219_s26  ;;  %329 = vperm.xlu0 %554, %v326_v0   ;;  %240 = vst.msk [vmem:[#allocation2] sm:$0xf] %vm239_vm0, %v636_v5  ;;  %s352_s26 = sshll.u32 %s348_s19, 4  ;;  %s353_s26 = int_to_ptr.hbm [resolvable:$true] %s352_s26 }
  0x17   : > { %s569_s28 = sshra.s32 %s353_s26, 4  ;;  %s570_s28 = int_to_ptr.hbm [resolvable:$true] %s569_s28 }
  0x18   : > { %s228_s30 = scalar_lea.vmem %s762_s0, %s496_s27  ;;  %s337_s27 = scalar_lea.sflag [#allocation4], %s214_s8 }
  0x19   : > { %v482_v1 = vld [vmem:[%s228_s30 + $0x30] sm:$0xf]  ;;  %v495_v2 = vld [vmem:[%s228_s30 + $0x30] sm:$0x30]  ;;  %v494_v7 = vld [vmem:[%s228_s30 + $0x28] sm:$0xff]  ;;  %s571_s15 = scalar_lea.hbm %s570_s28, 2  ;;  %p576_p1 = scmp.lt.s32.totalorder %s570_s28, %s765_s3 }
  0x1a   : > { %v483_v4 = vor.u32 %v495_v2, %v482_v1  ;;  %v493_v8 = vld [vmem:[%s228_s30 + $0x20] sm:$0xff]  ;;  %v492_v9 = vld [vmem:[%s228_s30 + $0x18] sm:$0xff]  ;;  %v491_v10 = vld [vmem:[%s228_s30 + $0x10] sm:$0xff]  ;;  %p572_p12 = scmp.ne.s32.totalorder %s570_s28, %s571_s15  ;;  %p577_p2 = scmp.lt.s32.totalorder %s575_s4, %s571_s15 }
  0x1b   : > { %v490_v11 = vld [vmem:[%s228_s30 + $0x8] sm:$0xff]  ;;  %v489_v12 = vld [vmem:[%s228_s30] sm:$0xff] }
  0x1c   : > { %v304_v6 = vsel %vm302_vm1, %v483_v4, 0  ;;  %p573_p13 = pnand %p572_p12, %p697_p4  ;;  %p578_p3 = por %p577_p2, %p576_p1 }
  0x1d   : > { %307 = vmatpush.bf16.msra.mxu0 %v304_v6  ;;  %v241_v14 = vld [vmem:[#allocation2] sm:$0xf] }
  0x1e   : > { %p574_p0 = pneg %p573_p13 }
  0x20   : > { %p579_p5 = pnand %p578_p3, %p574_p0 }
  0x21   : > { %308 = vmatpush.bf16.msra.mxu0 %v494_v7 }
  0x25   : > { %309 = vmatpush.bf16.msra.mxu0 %v493_v8 }
  0x29   : > { %310 = vmatpush.bf16.msra.mxu0 %v492_v9 }
  0x2d   : > { %311 = vmatpush.bf16.msra.mxu0 %v491_v10 }
  0x31   : > { %312 = vmatpush.bf16.msra.mxu0 %v490_v11 }
  0x35   : > { %313 = vmatpush.bf16.msra.mxu0 %v489_v12 }
  0x38   : > { %484 = vmatmul.msk.bf16.vlgmr.msra.gmra.mxu0 %vm298_vm2, %v242_v13 }
  0x88   : > { %v330_v18 = vpop.permute.xlu0 %329 }
  0xb5   : > { %v315_v15 = vpop.f32.mrf.mxu0 }
  0xb6   : > { %v319_v16 = vadd.f32 %v315_v15, %v241_v14 }
  0xb8   : > { %321 = vst.msk [vmem:[#allocation2] sm:$0xf] %vm239_vm0, %v319_v16 }
  0xbd   : > { %v317_v17 = vpop.f32.mrf.mxu0 }
  0xbf   : > { %v325_v19 = vld [vmem:[#allocation2] sm:$0xf] }
  0xc0   : > { %v332_v20 = vadd.f32 %v330_v18, %v325_v19 }
  0xc2   : > { %v333_v21 = vpack.c.bf16 %v332_v20, %v332_v20 }
  0xc4   : > { %335 = vst.msk [vmem:[%s216_s21] sm:$0x3] %vm334_vm3, %v333_v21 }
  0xc5   : > { %582 = shalt.err (!%p579_p5)
}
  0xc6   : > { %497 = dma.vmem_to_hbm [thread:$0]  (%p697_p4), %s351_s23, 32, %s353_s26, %s337_s27  }
  0xc7 PF: > { %p503_p6 = scmp.ge.s32.totalorder %s633_s17, 2  ;;  %s364_s7 = sand.u32 1, %s613_s12  }
  0xc8   : > { %s365_s8 = scalar_lea.sflag [#allocation4], %s364_s7 }
  0xc9   : > { %p500_p7 = pnand %p503_p6, %p704_p8 }
  0xcb   : > { %p501_p9 = pneg %p500_p7 }
  0xcd   : > { %608 = dma.done.wait (%p501_p9), %s365_s8, 32  }
  0xce   : > { %610 = vsyncadd (%p501_p9), %s365_s8, 4294967264  ;;  %s16_s17 = sadd.s32 1, %s633_s17   ;;  %s768_s12 = smov %s617_s13 }
  0xcf   : > { %p13_p10 = scmp.ge.s32.totalorder %s16_s17, 4   ;;  %s769_s13 = smov %s621_s14 }
  0xd0   : > { %s770_s14 = smov %s710_s25  ;;  %s771_s15 = smov %s629_s16 }
  0xd1   : > { %s772_s16 = smov %s774_s20  ;;  %15 = sbr.rel (!%p13_p10) target bundleno = 4 (0x4), region = 78 }
  0xd6   :  { %371 = vsyncpa [#allocation4], 1 }
  0xd7   :  { %373 = vsyncpa [#allocation4 + $0x1], 1 }

</bundles_post_ra>
